<compile_context>
chip_gen: v5e
topology: v5e:2x2
jax: 0.10.0
libtpu: 0.0.40
codegen_flags: <defaults>
</compile_context>

<pallas_src>
import functools

import jax
import jax.numpy as jnp
from jax import lax
from jax.experimental import pallas as pl
from jax.experimental.pallas import tpu as pltpu

_LANE = 128  # batch-tile lane alignment (sufficient on v5e's 128-wide MXU too)


def _cdiv(a, b):
    return -(-a // b)


def _round_up(x, m):
    return _cdiv(x, m) * m


# -----------------------------------------------------------------------------
# Kernel
# -----------------------------------------------------------------------------
def mlp_kernel(x_ref, p_ref, o_ref):
    """One batch tile of the fused 64->64->32->16->1 MLP.

    x_ref: (TB, 64)  input rows in native layout (f32 or bf16)
    p_ref: (128,128) f32 packed parameter slab (see pack_params), VMEM-resident
    o_ref: (1, TB)   f32 sigmoid outputs (lane-dense)
    """
    x = x_ref[...]                                         # (TB, 64)

    # ---- Layer 1: Linear(64,64) + Tanh (Dropout = identity in eval) --------
    # Contract directly over x's feature axis: (64out,64in) x (TB,64in) -> (64out,TB)
    # so no wrapper-side transpose/pad of x is needed.
    w1 = p_ref[0:64, 0:64].astype(x.dtype)                 # (64, 64)
    b1 = p_ref[0:64, 64:65]                                # (64, 1) f32
    h = jnp.tanh(
        lax.dot_general(w1, x, (((1,), (1,)), ((), ())),
                        preferred_element_type=jnp.float32) + b1)       # (64, TB)

    # ---- Layer 2: Linear(64,32) + Tanh --------------------------------------
    w2 = p_ref[64:96, 0:64]                                # (32, 64)
    b2 = p_ref[64:96, 64:65]                               # (32, 1)
    h = jnp.tanh(jnp.dot(w2, h, preferred_element_type=jnp.float32) + b2)  # (32, TB)

    # ---- Layer 3: Linear(32,16) + Tanh --------------------------------------
    w3 = p_ref[96:112, 0:32]                               # (16, 32)
    b3 = p_ref[96:112, 32:33]                              # (16, 1)
    h = jnp.tanh(jnp.dot(w3, h, preferred_element_type=jnp.float32) + b3)  # (16, TB)
    # NOTE(v6e): 112 tanh + 1 sigmoid per batch element; if post-DMA-fix
    # profiling shows the EUP slot binding, the kernel is at its architectural
    # floor and further memory-path work won't pay off.

    # ---- Layer 4: Linear(16,1) + Sigmoid ------------------------------------
    # VPU multiply + sublane (XLU) reduce; an MXU matmul would have a single
    # useful output column here.
    w4 = p_ref[96:112, 33:34]                              # (16, 1)
    b4 = p_ref[112:113, 0:1]                               # (1, 1)
    logits = jnp.sum(w4 * h, axis=0, keepdims=True) + b4   # (1, TB)
    o_ref[...] = jax.nn.sigmoid(logits).astype(o_ref.dtype)


# -----------------------------------------------------------------------------
# Wrapper
# -----------------------------------------------------------------------------
_SEM_CANDIDATES = None  # resolved lazily (needs jax.devices())
_SEM_IDX = 0


def _dim_semantics_candidates():
    """Prefer CORE_PARALLEL on v7x (2 TensorCores/chip) so batch tiles are split
    across both cores and both HBM paths; otherwise plain "parallel" (the
    standard megacore mechanism). Any failure falls back to "parallel"."""
    global _SEM_CANDIDATES
    if _SEM_CANDIDATES is None:
        kind = jax.devices()[0].device_kind.lower()
        core_parallel = getattr(pltpu, "CORE_PARALLEL", None)
        if core_parallel is not None and ("v7" in kind or "7x" in kind):
            _SEM_CANDIDATES = (core_parallel, "parallel")
        else:
            _SEM_CANDIDATES = ("parallel",)
    return _SEM_CANDIDATES


@functools.lru_cache(maxsize=None)
def _build_forward(B, TB, n_tiles, sem_idx):
    sem = _dim_semantics_candidates()[sem_idx]
    return pl.pallas_call(
        mlp_kernel,
        out_shape=jax.ShapeDtypeStruct((1, B), jnp.float32),
        grid=(n_tiles,),
        in_specs=[
            # x: streamed contiguous (TB, 64) row tiles straight from HBM.
            pl.BlockSpec((TB, 64), lambda i: (i, 0)),
            # packed params: constant index_map -> DMA'd once, VMEM-resident.
            pl.BlockSpec((128, 128), lambda i: (0, 0)),
        ],
        # Lane-dense (1, TB) output tiles; wrapper reshapes to (B, 1).
        out_specs=pl.BlockSpec((1, TB), lambda i: (0, i)),
        compiler_params=pltpu.CompilerParams(
            dimension_semantics=(sem,),
            vmem_limit_bytes=32 * 1024 * 1024),
    )


def team_level_nn_forward(x, packed_params, *, tb=8192, use_bf16_inputs=False):
    """x: (B, 64). packed_params: (128, 128) slab from pack_params(). -> (B, 1)."""
    global _SEM_IDX
    B, F = x.shape
    if F != 64:
        raise ValueError(f"expected 64 input features, got {F}")
    if use_bf16_inputs:
        # Halves the dominant HBM stream (mem-bound kernel); ~1e-3 accuracy vs
        # the f32 reference. Ideally the caller already holds x in bf16.
        x = x.astype(jnp.bfloat16)

    if B <= tb:
        TB = B                                  # single tile: blocks == full arrays
    else:
        n = _cdiv(B, tb)                        # balanced, 128-aligned tiles;
        TB = _round_up(_cdiv(B, n), _LANE)      # ragged last tile handled by Pallas
    n_tiles = _cdiv(B, TB)

    candidates = _dim_semantics_candidates()
    while True:
        try:
            call = _build_forward(B, TB, n_tiles, _SEM_IDX)
            out = call(x, packed_params)
            break
        except Exception:
            if _SEM_IDX + 1 >= len(candidates):
                raise
            _SEM_IDX += 1                       # e.g. CORE_PARALLEL unsupported

    return out.reshape(B, 1)                    # (1, B) -> (B, 1): free (row-major)


def pack_params(params):
    """Pack all weights/biases into one (128, 128) f32 slab (~64 KiB).

    Layout (rows x cols):
      [  0: 64,  0: 64] = W1^T   [  0: 64, 64] = b1
      [ 64: 96,  0: 64] = W2^T   [ 64: 96, 64] = b2
      [ 96:112,  0: 32] = W3^T   [ 96:112, 32] = b3
      [ 96:112, 33]     = w4     [112, 0]      = b4
    """
    P = jnp.zeros((128, 128), jnp.float32)
    P = P.at[0:64, 0:64].set(params["w1"].T)
    P = P.at[0:64, 64:65].set(params["b1"].T)
    P = P.at[64:96, 0:64].set(params["w2"].T)
    P = P.at[64:96, 64:65].set(params["b2"].T)
    P = P.at[96:112, 0:32].set(params["w3"].T)
    P = P.at[96:112, 32:33].set(params["b3"].T)
    P = P.at[96:112, 33:34].set(params["w4"])
    P = P.at[112:113, 0:1].set(params["b4"])
    return P


def init_params(key):
    """Deterministic init, PyTorch nn.Linear-style uniform ranges.
    Weights stored as (in_features, out_features); biases as (1, out_features)."""
    dims = [(64, 64), (64, 32), (32, 16), (16, 1)]
    params = {}
    for idx, (fan_in, fan_out) in enumerate(dims, start=1):
        key, kw, kb = jax.random.split(key, 3)
        bound = 1.0 / jnp.sqrt(fan_in)
        params[f"w{idx}"] = jax.random.uniform(
            kw, (fan_in, fan_out), jnp.float32, -bound, bound)
        params[f"b{idx}"] = jax.random.uniform(
            kb, (1, fan_out), jnp.float32, -bound, bound)
    return params


def reference_forward(x, params):
    h = jnp.tanh(x @ params["w1"] + params["b1"])
    h = jnp.tanh(h @ params["w2"] + params["b2"])
    h = jnp.tanh(h @ params["w3"] + params["b3"])
    return jax.nn.sigmoid(h @ params["w4"] + params["b4"])


if __name__ == "__main__":
    key = jax.random.PRNGKey(0)
    kx, kx2, kp = jax.random.split(key, 3)

    params = init_params(kp)
    packed = pack_params(params)

    # Small single-tile case: every block equals the full array.
    B = 8
    x = jax.random.normal(kx, (B, 64), jnp.float32)
    out = jax.block_until_ready(team_level_nn_forward(x, packed))
    ref = reference_forward(x, params)
    assert out.shape == (B, 1)
    assert jnp.allclose(out, ref, atol=1e-5, rtol=1e-5), "mismatch vs reference (single tile)"

    # Multi-tile case with a ragged last tile (forced TB=128) to exercise the
    # production tiling path at small scale.
    B2 = 300
    x2 = jax.random.normal(kx2, (B2, 64), jnp.float32)
    out2 = jax.block_until_ready(team_level_nn_forward(x2, packed, tb=128))
    ref2 = reference_forward(x2, params)
    assert out2.shape == (B2, 1)
    assert jnp.allclose(out2, ref2, atol=1e-5, rtol=1e-5), "mismatch vs reference (ragged tiles)"

    print("KERNEL_OK")
</pallas_src>

<mosaic_0001>
module attributes {stable_mosaic.version = 11 : i64} {
  func.func @mlp_kernel(%arg0: i32, %arg1: memref<8x64xf32, #tpu.memory_space<vmem>>, %arg2: memref<128x128xf32, #tpu.memory_space<vmem>>, %arg3: memref<1x8xf32, #tpu.memory_space<vmem>>) attributes {dimension_semantics = [#tpu.dimension_semantics<parallel>], iteration_bounds = array<i64: 1>, scalar_prefetch = 0 : i64, scratch_operands = 0 : i64, tpu.core_type = #tpu.core_type<tc>, window_params = [{transform_indices = @transform_0, window_bounds = array<i64: 8, 64>}, {pipeline_mode = #tpu.pipeline_mode<synchronous>, transform_indices = @transform_1, window_bounds = array<i64: 128, 128>}, {transform_indices = @transform_2, window_bounds = array<i64: 1, 8>}]} {
    %c0 = arith.constant 0 : index
    %c0_0 = arith.constant 0 : index
    %0 = vector.load %arg1[%c0, %c0_0] : memref<8x64xf32, #tpu.memory_space<vmem>>, vector<8x64xf32>
    %c0_1 = arith.constant 0 : index
    %c0_2 = arith.constant 0 : index
    %1 = vector.load %arg2[%c0_1, %c0_2] : memref<128x128xf32, #tpu.memory_space<vmem>>, vector<64x64xf32>
    %c0_3 = arith.constant 0 : index
    %c64 = arith.constant 64 : index
    %2 = vector.load %arg2[%c0_3, %c64] : memref<128x128xf32, #tpu.memory_space<vmem>>, vector<64x1xf32>
    %cst = arith.constant dense<0.000000e+00> : vector<64x8xf32>
    %3 = tpu.matmul %1, %0, %cst {dimension_numbers = #tpu.dot_dimension_numbers<[1], [1], [0], [0], [0, 0, 1, 0], [], []>} : vector<64x64xf32>, vector<8x64xf32>, vector<64x8xf32> -> vector<64x8xf32>
    %4 = vector.broadcast %2 : vector<64x1xf32> to vector<64x8xf32>
    %5 = arith.addf %3, %4 : vector<64x8xf32>
    %6 = math.tanh %5 : vector<64x8xf32>
    %c64_4 = arith.constant 64 : index
    %c0_5 = arith.constant 0 : index
    %7 = vector.load %arg2[%c64_4, %c0_5] : memref<128x128xf32, #tpu.memory_space<vmem>>, vector<32x64xf32>
    %c64_6 = arith.constant 64 : index
    %c64_7 = arith.constant 64 : index
    %8 = vector.load %arg2[%c64_6, %c64_7] : memref<128x128xf32, #tpu.memory_space<vmem>>, vector<32x1xf32>
    %cst_8 = arith.constant dense<0.000000e+00> : vector<32x8xf32>
    %9 = tpu.matmul %7, %6, %cst_8 {dimension_numbers = #tpu.dot_dimension_numbers<[1], [0], [0], [1], [0, 0, 1, 1], [], []>} : vector<32x64xf32>, vector<64x8xf32>, vector<32x8xf32> -> vector<32x8xf32>
    %10 = vector.broadcast %8 : vector<32x1xf32> to vector<32x8xf32>
    %11 = arith.addf %9, %10 : vector<32x8xf32>
    %12 = math.tanh %11 : vector<32x8xf32>
    %c96 = arith.constant 96 : index
    %c0_9 = arith.constant 0 : index
    %13 = vector.load %arg2[%c96, %c0_9] : memref<128x128xf32, #tpu.memory_space<vmem>>, vector<16x32xf32>
    %c96_10 = arith.constant 96 : index
    %c32 = arith.constant 32 : index
    %14 = vector.load %arg2[%c96_10, %c32] : memref<128x128xf32, #tpu.memory_space<vmem>>, vector<16x1xf32>
    %cst_11 = arith.constant dense<0.000000e+00> : vector<16x8xf32>
    %15 = tpu.matmul %13, %12, %cst_11 {dimension_numbers = #tpu.dot_dimension_numbers<[1], [0], [0], [1], [0, 0, 1, 1], [], []>} : vector<16x32xf32>, vector<32x8xf32>, vector<16x8xf32> -> vector<16x8xf32>
    %16 = vector.broadcast %14 : vector<16x1xf32> to vector<16x8xf32>
    %17 = arith.addf %15, %16 : vector<16x8xf32>
    %18 = math.tanh %17 : vector<16x8xf32>
    %c96_12 = arith.constant 96 : index
    %c33 = arith.constant 33 : index
    %19 = vector.load %arg2[%c96_12, %c33] : memref<128x128xf32, #tpu.memory_space<vmem>>, vector<16x1xf32>
    %c112 = arith.constant 112 : index
    %c0_13 = arith.constant 0 : index
    %20 = vector.load %arg2[%c112, %c0_13] : memref<128x128xf32, #tpu.memory_space<vmem>>, vector<1x1xf32>
    %21 = vector.broadcast %19 : vector<16x1xf32> to vector<16x8xf32>
    %22 = arith.mulf %21, %18 : vector<16x8xf32>
    %cst_14 = arith.constant dense<0.000000e+00> : vector<8xf32>
    %23 = vector.multi_reduction <add>, %22, %cst_14 [0] : vector<16x8xf32> to vector<8xf32>
    %24 = vector.shape_cast %23 : vector<8xf32> to vector<1x8xf32>
    %25 = vector.broadcast %20 : vector<1x1xf32> to vector<1x8xf32>
    %26 = arith.addf %24, %25 : vector<1x8xf32>
    %27 = arith.negf %26 : vector<1x8xf32>
    %28 = math.exp %27 : vector<1x8xf32>
    %cst_15 = arith.constant 1.000000e+00 : f32
    %29 = vector.broadcast %cst_15 : f32 to vector<1x8xf32>
    %30 = arith.addf %29, %28 : vector<1x8xf32>
    %31 = arith.divf %29, %30 : vector<1x8xf32>
    %c0_16 = arith.constant 0 : index
    %c0_17 = arith.constant 0 : index
    %32 = vector.load %arg3[%c0_16, %c0_17] : memref<1x8xf32, #tpu.memory_space<vmem>>, vector<1x8xf32>
    tpu.vector_store %arg3[%c0_16, %c0_17], %31 {strides = array<i32>} : memref<1x8xf32, #tpu.memory_space<vmem>>, vector<1x8xf32>,
    return
  }
  func.func @transform_0(%arg0: i32) -> (i32, i32) {
    %c0_i32 = arith.constant 0 : i32
    %c0_i32_0 = arith.constant 0 : i32
    return %arg0, %c0_i32 : i32, i32
  }
  func.func @transform_1(%arg0: i32) -> (i32, i32) {
    %c0_i32 = arith.constant 0 : i32
    %c0_i32_0 = arith.constant 0 : i32
    %c0_i32_1 = arith.constant 0 : i32
    return %c0_i32, %c0_i32_0 : i32, i32
  }
  func.func @transform_2(%arg0: i32) -> (i32, i32) {
    %c0_i32 = arith.constant 0 : i32
    %c0_i32_0 = arith.constant 0 : i32
    return %c0_i32, %arg0 : i32, i32
  }
}

</mosaic_0001>

<bundles_post_ra>
// kernel: tpu_custom_call.1
= control target key start
LH: loop header
LB: loop body
LE: loop exit
PB: predicated region body
PF: predicated region fallthrough
CT: control target
= control target key end

     0   :  { %7 = vsyncpa [#allocation3], 0  ;;  %s545_s0 = inlined_call_operand.hbm [shape: f32[8,64], index: 0, kind: input, shape index: {}]   ;;  %s546_s1 = inlined_call_operand.hbm [shape: f32[128,128], index: 1, kind: input, shape index: {}]   ;;  %s547_s2 = inlined_call_operand.hbm [shape: f32[1,8], index: 2, kind: output, shape index: {}]  }
   0x1   :  { %8 = vsyncpa [#allocation6], 0 }
   0x2   :  { %9 = vsyncpa [#allocation4], 0  ;;  %s15_s11 = sshll.u32 %s545_s0, 4  ;;  %s486_s12 = smov [#allocation2]   ;;  %s16_s11 = int_to_ptr.hbm [resolvable:$true] %s15_s11 }
   0x3   :  { %s17_s13 = sshll.u32 %s486_s12, 4  ;;  %s25_s16 = sshll.u32 %s546_s1, 4  ;;  %s18_s13 = int_to_ptr.vmem [resolvable:$true] %s17_s13  ;;  %s26_s16 = int_to_ptr.hbm [resolvable:$true] %s25_s16 }
   0x4   :  { %20 = dma.hbm_to_vmem [thread:$0]  %s16_s11, 128, %s18_s13, [#allocation3]  }
   0x5   :  { %s487_s17 = smov [#allocation5]   ;;  %s488_s19 = smov 128  }
   0x6   :  { %s27_s18 = sshll.u32 %s487_s17, 4  ;;  %s489_s20 = smov 8   ;;  %s28_s18 = int_to_ptr.vmem [resolvable:$true] %s27_s18 }
   0x7   :  { %33 = dma.hbm_to_vmem [thread:$0]  %s26_s16, 2048, %s28_s18, [#allocation6], %s488_s19, %s488_s19, %s489_s20  }
   0x8   :  { %480 = dma.done.wait [#allocation3], 128  }
   0x9   :  { %481 = vsyncadd [#allocation3], 4294967168 }
   0xa   :  { %482 = dma.done.wait [#allocation6], 2048  }
   0xb   :  { %483 = vsyncadd [#allocation6], 4294965248  ;;  %v490_v0 = vmov 64   ;;  %vm91_vm0 = vcmask 523264   ;;  %v42_v1 = vld [vmem:[#allocation2] sm:$0xff]  ;;  %v47_v2 = vld [vmem:[#allocation5 + $0x20] sm:$0xff] }
   0xc   :  { %368 = vset.pattern.permute.xlu1 %v490_v0  ;;  %367 = vset.pattern.permute.xlu0 %v490_v0  ;;  %v43_v3 = vld [vmem:[#allocation5] sm:$0xff]  ;;  %v48_v4 = vld [vmem:[#allocation5 + $0x28] sm:$0xff]  ;;  %v50_v5 = vld [vmem:[#allocation5 + $0x38] sm:$0xff]  ;;  %v491_v53 = vmov 32   ;;  %v492_v54 = vmov 33   ;;  %v493_v62 = vmov 0  }
   0xd   :  { %369 = vset.pattern.permute.xlu2 %v490_v0  ;;  %349 = vmatpush.xpose.msk.msra.mxu3 %vm91_vm0, %v42_v1  ;;  %v46_v6 = vld [vmem:[#allocation5 + $0x18] sm:$0xff]  ;;  %v44_v7 = vld [vmem:[#allocation5 + $0x8] sm:$0xff]  ;;  %v49_v8 = vld [vmem:[#allocation5 + $0x30] sm:$0xff]  ;;  %vm237_vm1 = vcmask 261120   ;;  %vm278_vm2 = vcmask 64512   ;;  %s494_s0 = smov [#allocation7]  }
   0xe   :  { %333 = vmatpush.xpose.msk.msra.mxu0 %vm91_vm0, %v42_v1  ;;  %78 = vperm.xlu1 %368, %v48_v4   ;;  %v45_v9 = vld [vmem:[#allocation5 + $0x10] sm:$0xff]  ;;  %v522_v10 = vld [vmem:[#allocation5 + $0x58] sm:$0xff]  ;;  %v529_v12 = vld [vmem:[#allocation5 + $0x48] sm:$0xff]  ;;  %s320_s1 = sshll.u32 %s494_s0, 4  ;;  %s322_s23 = sshll.u32 %s547_s2, 4  ;;  %vm313_vm6 = vcmask 57344   ;;  %s321_s1 = int_to_ptr.vmem [resolvable:$true] %s320_s1  ;;  %s323_s23 = int_to_ptr.hbm [resolvable:$true] %s322_s23 }
   0xf   :  { %88 = vperm.xlu0 %367, %v50_v5   ;;  %68 = vperm.xlu2 %369, %v46_v6   ;;  %v527_v11 = vld [vmem:[#allocation5 + $0x50] sm:$0xff]  ;;  %v160_v13 = vld [vmem:[#allocation5 + $0x40] sm:$0xff]  ;;  %v226_v52 = vld [vmem:[#allocation5 + $0x68] sm:$0xff] }
  0x10   :  { %338 = vmatmul.msk.f32.vlgmr.msra.gmra.mxu3 %vm91_vm0, %v47_v2  ;;  %v225_v51 = vld [vmem:[#allocation5 + $0x60] sm:$0xff]  ;;  %v267_v61 = vld [vmem:[#allocation5 + $0x70] sm:$0x1] }
  0x11   :  { %334 = vmatmul.msk.f32.vlgmr.msra.gmra.mxu0 %vm91_vm0, %v43_v3 }
  0x16   :  { %73 = vperm.xlu1 %368, %v47_v2  }
  0x17   :  { %83 = vperm.xlu0 %367, %v49_v8   ;;  %63 = vperm.xlu2 %369, %v45_v9  }
  0x18   :  { %339 = vmatmul.msk.f32.gmra.mxu3 %vm91_vm0, %v48_v4 }
  0x19   :  { %335 = vmatmul.msk.f32.gmra.mxu0 %vm91_vm0, %v44_v7 }
  0x1e   :  { %53 = vperm.xlu1 %368, %v43_v3  }
  0x1f   :  { %58 = vperm.xlu0 %367, %v44_v7   ;;  %181 = vperm.xlu2 %369, %v522_v10  }
  0x20   :  { %340 = vmatmul.msk.f32.gmra.mxu3 %vm91_vm0, %v49_v8 }
  0x21   :  { %336 = vmatmul.msk.f32.gmra.mxu0 %vm91_vm0, %v45_v9 }
  0x26   :  { %171 = vperm.xlu1 %368, %v529_v12  }
  0x27   :  { %176 = vperm.xlu0 %367, %v527_v11   ;;  %166 = vperm.xlu2 %369, %v160_v13  }
  0x28   :  { %341 = vmatmul.msk.f32.gmra.mxu3 %vm91_vm0, %v50_v5 }
  0x29   :  { %337 = vmatmul.msk.f32.gmra.mxu0 %vm91_vm0, %v46_v6 }
  0x2e   :  { %371 = vset.pattern.permute.xlu1 %v491_v53 }
  0x2f   :  { %370 = vset.pattern.permute.xlu0 %v491_v53  ;;  %234 = vperm.xlu1 %371, %v226_v52  }
  0x30   :  { %229 = vperm.xlu0 %370, %v225_v51   ;;  %372 = vset.pattern.permute.xlu2 %v492_v54 }
  0x31   :  { %269 = vperm.xlu2 %372, %v225_v51  }
  0x37   :  { %373 = vset.pattern.permute.xlu1 %v492_v54 }
  0x38   :  { %375 = vset.pattern.permute.xlu0 %v493_v62  ;;  %273 = vperm.xlu1 %373, %v226_v52  }
  0x39   :  { %374 = vset.pattern.permute.xlu2 %v493_v62 }
  0x3a   :  { %290 = vperm.xlu2 %374, %v267_v61  }
  0x69   :  { %v69_v22 = vpop.permute.xlu2 %68 }
  0x71   :  { %v64_v32 = vpop.permute.xlu2 %63 }
  0x79   :  { %v182_v47 = vpop.permute.xlu2 %181 }
  0x80   :  { %v79_v18 = vpop.permute.xlu1 %78 }
  0x81   :  { %v89_v19 = vpop.permute.xlu0 %88  ;;  %v167_v63 = vpop.permute.xlu2 %166 }
  0x88   :  { %v74_v23 = vpop.permute.xlu1 %73 }
  0x89   :  { %v84_v24 = vpop.permute.xlu0 %83 }
  0x8e   :  { %v128_v14 = vpop.f32.mrf.mxu0 }
  0x90   :  { %v54_v35 = vpop.permute.xlu1 %53 }
  0x91   :  { %v59_v36 = vpop.permute.xlu0 %58  ;;  %v129_v40 = vadd.f32 %v128_v14, %v54_v35 }
  0x93   :  { %v140_v15 = vpop.f32.mrf.mxu3 }
  0x94   :  { %v141_v30 = vadd.f32 %v140_v15, %v74_v23 }
  0x96   :  { %v131_v17 = vpop.f32.mrf.mxu0 }
  0x97   :  { %v132_v38 = vadd.f32 %v131_v17, %v59_v36 }
  0x98   :  { %v172_v57 = vpop.permute.xlu1 %171 }
  0x99   :  { %v177_v56 = vpop.permute.xlu0 %176 }
  0x9b   :  { %v143_v16 = vpop.f32.mrf.mxu3 }
  0x9c   :  { %v144_v28 = vadd.f32 %v143_v16, %v79_v18 }
  0x9e   :  { %v134_v21 = vpop.f32.mrf.mxu0 }
  0x9f   :  { %v135_v34 = vadd.f32 %v134_v21, %v64_v32 }
  0xa1   :  { %v235_v7 = vpop.permute.xlu1 %234 }
  0xa2   :  { %v230_v5 = vpop.permute.xlu0 %229 }
  0xa3   :  { %v146_v20 = vpop.f32.mrf.mxu3 }
  0xa4   :  { %v147_v26 = vadd.f32 %v146_v20, %v84_v24 }
  0xa6   :  { %v137_v29 = vpop.f32.mrf.mxu0 }
  0xa7   :  { %v138_v31 = vadd.f32 %v137_v29, %v69_v22 }
  0xab   :  { %v149_v25 = vpop.f32.mrf.mxu3 }
  0xac   :  { %v150_v27 = vadd.f32 %v149_v25, %v89_v19 }
  0xae   :  { %376 = vtanh.f32 %v150_v27 }
  0xaf   :  { %378 = vtanh.f32 %v147_v26 }
  0xb0   :  { %380 = vtanh.f32 %v144_v28 }
  0xb1   :  { %382 = vtanh.f32 %v141_v30 }
  0xb2   :  { %384 = vtanh.f32 %v138_v31 }
  0xb3   :  { %386 = vtanh.f32 %v135_v34 }
  0xb4   :  { %v377_v33 = vpop.eup %376  ;;  %388 = vtanh.f32 %v132_v38 }
  0xb5   :  { %200 = vmatpush.msra.mxu1 %v377_v33  ;;  %350 = vmatpush.msra.mxu2 %v377_v33  ;;  %v379_v37 = vpop.eup %378  ;;  %390 = vtanh.f32 %v129_v40 }
  0xb6   :  { %v381_v39 = vpop.eup %380 }
  0xb7   :  { %201 = vmatpush.msra.mxu1 %v379_v37  ;;  %351 = vmatpush.msra.mxu2 %v379_v37  ;;  %v383_v41 = vpop.eup %382 }
  0xb8   :  { %v385_v42 = vpop.eup %384 }
  0xb9   :  { %202 = vmatpush.msra.mxu1 %v381_v39  ;;  %352 = vmatpush.msra.mxu2 %v381_v39  ;;  %v387_v43 = vpop.eup %386 }
  0xba   :  { %v389_v44 = vpop.eup %388 }
  0xbb   :  { %203 = vmatpush.msra.mxu1 %v383_v41  ;;  %353 = vmatpush.msra.mxu2 %v383_v41  ;;  %v391_v45 = vpop.eup %390 }
  0xbd   :  { %204 = vmatpush.msra.mxu1 %v385_v42  ;;  %354 = vmatpush.msra.mxu2 %v385_v42 }
  0xbf   :  { %205 = vmatpush.msra.mxu1 %v387_v43  ;;  %355 = vmatpush.msra.mxu2 %v387_v43 }
  0xc1   :  { %206 = vmatpush.msra.mxu1 %v389_v44  ;;  %356 = vmatpush.msra.mxu2 %v389_v44 }
  0xc3   :  { %207 = vmatpush.msra.mxu1 %v391_v45  ;;  %357 = vmatpush.msra.mxu2 %v391_v45 }
  0xc4   :  { %342 = vmatmul.msk.f32.vlgmr.msra.gmra.mxu1 %vm91_vm0, %v160_v13  ;;  %345 = vmatmul.msk.f32.vlgmr.msra.gmra.mxu2 %vm91_vm0, %v522_v10 }
  0xcc   :  { %343 = vmatmul.msk.f32.gmra.mxu1 %vm91_vm0, %v529_v12  ;;  %v274_v12 = vpop.permute.xlu1 %273 }
  0xd4   :  { %344 = vmatmul.msk.f32.gmra.mxu1 %vm91_vm0, %v527_v11  ;;  %v270_v11 = vpop.permute.xlu2 %269 }
  0xdc   :  { %v291_v24 = vpop.permute.xlu2 %290 }
 0x141   :  { %v209_v46 = vpop.f32.mrf.mxu1 }
 0x142   :  { %v210_v0 = vadd.f32 %v209_v46, %v167_v63 }
 0x147   :  { %v218_v48 = vpop.f32.mrf.mxu2 }
 0x148   :  { %v219_v49 = vadd.f32 %v218_v48, %v182_v47 }
 0x149   :  { %v212_v50 = vpop.f32.mrf.mxu1 }
 0x14a   :  { %392 = vtanh.f32 %v219_v49  ;;  %v213_v59 = vadd.f32 %v212_v50, %v172_v57 }
 0x150   :  { %v393_v55 = vpop.eup %392 }
 0x151   :  { %v215_v58 = vpop.f32.mrf.mxu1  ;;  %254 = vmatpush.msrb.mxu2 %v393_v55 }
 0x152   :  { %v216_v60 = vadd.f32 %v215_v58, %v177_v56 }
 0x154   :  { %394 = vtanh.f32 %v216_v60 }
 0x155   :  { %396 = vtanh.f32 %v213_v59 }
 0x156   :  { %398 = vtanh.f32 %v210_v0 }
 0x15a   :  { %v395_v1 = vpop.eup %394 }
 0x15b   :  { %255 = vmatpush.msrb.mxu2 %v395_v1  ;;  %v397_v2 = vpop.eup %396 }
 0x15c   :  { %v399_v3 = vpop.eup %398 }
 0x15d   :  { %256 = vmatpush.msrb.mxu2 %v397_v2 }
 0x15f   :  { %257 = vmatpush.msrb.mxu2 %v399_v3 }
 0x160   :  { %346 = vmatmul.msk.f32.vlgmr.msrb.gmra.mxu2 %vm237_vm1, %v225_v51 }
 0x168   :  { %347 = vmatmul.msk.f32.gmra.mxu2 %vm237_vm1, %v226_v52 }
 0x1e3   :  { %v259_v4 = vpop.f32.mrf.mxu2 }
 0x1e4   :  { %v260_v6 = vadd.f32 %v259_v4, %v230_v5 }
 0x1e6   :  { %400 = vtanh.f32 %v260_v6 }
 0x1eb   :  { %v262_v8 = vpop.f32.mrf.mxu2 }
 0x1ec   :  { %v263_v9 = vadd.f32 %v262_v8, %v235_v7  ;;  %v401_v10 = vpop.eup %400 }
 0x1ed   :  { %v276_v13 = vmul.f32 %v401_v10, %v270_v11 }
 0x1ee   :  { %402 = vtanh.f32 %v263_v9 }
 0x1ef   :  { %v279_v16 = vsel %vm278_vm2, %v276_v13, 0.0 }
 0x1f4   :  { %v403_v14 = vpop.eup %402 }
 0x1f5   :  { %v277_v15 = vmul.f32 %v403_v14, %v274_v12 }
 0x1f7   :  { %v280_v17 = vsel %vm278_vm2, %v277_v15, 0.0 }
 0x1f8   :  { %v281_v18 = vadd.f32 %v280_v17, %v279_v16 }
 0x1fa   :  { %v282_v19 = vrot.slane %v281_v18, 4 }
 0x1fc   :  { %v283_v20 = vadd.f32 %v282_v19, %v281_v18 }
 0x1fe   :  { %v284_v21 = vrot.slane %v283_v20, 2 }
 0x200   :  { %v285_v22 = vadd.f32 %v284_v21, %v283_v20 }
 0x202   :  { %v286_v23 = vrot.slane %v285_v22, 1 }
 0x204   :  { %v287_v25 = vadd.f32 %v286_v23, %v285_v22 }
 0x206   :  { %v293_v26 = vadd.f32 %v291_v24, %v287_v25 }
 0x208   :  { %v348_v27 = vmul.f32 -1.442695, %v293_v26 }
 0x20a   :  { %404 = vpow2.f32 %v348_v27 }
 0x210   :  { %v405_v28 = vpop.eup %404 }
 0x211   :  { %v297_v29 = vadd.f32 1.0, %v405_v28 }
 0x213   :  { %406 = vrcp.f32 %v297_v29  ;;  %v309_v33 = vand.u32 2147483648, %v297_v29  ;;  %v307_v35 = vand.u32 2147483647, %v297_v29  ;;  %vm303_vm4 = vweird.f32 %v297_v29 }
 0x215   :  { %v310_v37 = vor.u32 1.1754944e-38, %v309_v33  ;;  %vm308_vm7 = vcmp.eq.f32.partialorder %v307_v35, 8.507059e+37 }
 0x219   :  { %v407_v30 = vpop.eup %406 }
 0x21a   :  { %v299_v31 = vmul.f32 %v407_v30, %v297_v29  ;;  %vm304_vm3 = vweird.f32 %v407_v30 }
 0x21b   :  { %vm305_vm5 = vmor %vm303_vm4, %vm304_vm3 }
 0x21c   :  { %v300_v32 = vsub.f32 1.0, %v299_v31 }
 0x21e   :  { %v301_v34 = vmul.f32 %v407_v30, %v300_v32 }
 0x220   :  { %v302_v36 = vadd.f32 %v407_v30, %v301_v34 }
 0x222   :  { %v306_v38 = vsel %vm305_vm5, %v407_v30, %v302_v36 }
 0x223   :  { %v311_v39 = vsel %vm308_vm7, %v310_v37, %v306_v38 }
 0x224   :  { %314 = vst.msk [vmem:[#allocation7] sm:$0x1] %vm313_vm6, %v311_v39 }
 0x225   :  { %325 = dma.vmem_to_hbm [thread:$0]  %s321_s1, 16, %s323_s23, [#allocation4]  }
 0x226   :  { %484 = dma.done.wait [#allocation4], 16  }
 0x227   :  { %485 = vsyncadd [#allocation4], 4294967280 }
 0x228   :  { %330 = vsyncpa [#allocation3], 1 }
 0x229   :  { %331 = vsyncpa [#allocation6], 1 }
 0x22a   :  { %332 = vsyncpa [#allocation4], 1 }

</bundles_post_ra>
